<compile_context>
chip_gen: v6e
topology: v6e:2x2x1
jax: 0.10.0
libtpu: 0.0.40
codegen_flags: <defaults>
</compile_context>

<pallas_src>
import math

import jax
import jax.numpy as jnp
import numpy as np
from jax.experimental import pallas as pl
from jax.experimental.pallas import tpu as pltpu

SUBBANDS = ("aaa", "aad", "ada", "add", "daa", "dad", "dda", "ddd")
_HAAR_SCALE = 1.0 / (2.0 * math.sqrt(2.0))
BN_EPS = 1e-5

# 8-point Haar butterfly as a sign matrix: sign[n, k] = (-1)^popcount(n & k),
# n = subband code (d-bits over D, H, W), k = corner code i*4 + j*2 + l.
_HMAT = np.array(
    [[1.0 if bin(n & k).count("1") % 2 == 0 else -1.0 for k in range(8)]
     for n in range(8)], dtype=np.float32)


def _haar_butterfly(x):
    """x: (8, C, T) corner slab, corner k = i*4 + j*2 + l over the (D, H, W) low bits.

    Returns the 8 UNSCALED Haar subbands (3-stage sum/diff butterfly, 24 add/sub per
    voxel-channel) in SUBBANDS order (index == 'd'-bit code over (D, H, W))."""
    c = [x[k] for k in range(8)]
    # W stage
    w = {}
    for i in range(2):
        for j in range(2):
            a, b = c[4 * i + 2 * j + 0], c[4 * i + 2 * j + 1]
            w[(i, j, 0)] = a + b
            w[(i, j, 1)] = a - b
    # H stage
    h = {}
    for i in range(2):
        for lw in range(2):
            a, b = w[(i, 0, lw)], w[(i, 1, lw)]
            h[(i, 0, lw)] = a + b
            h[(i, 1, lw)] = a - b
    # D stage
    out = []
    for n in range(8):
        hh, ww = (n >> 1) & 1, n & 1
        a, b = h[(0, hh, ww)], h[(1, hh, ww)]
        out.append(a + b if ((n >> 2) & 1) == 0 else a - b)
    return out


def _fused_conv_kernel(xr_ref, wfs_ref, conv_ref, stats_ref):
    """Pass 2: butterfly -> ONE fused (C, 8C) @ (8C, T) MXU matmul -> conv tile;
    accumulate per-(batch, t_outer) BN sum / sum-of-squares over the t_inner axis."""
    ti = pl.program_id(2)
    x = xr_ref[0].astype(jnp.float32)                                 # (8, C, T) f32
    slab = jnp.concatenate(_haar_butterfly(x), axis=0)                # (8C, T)
    # attention + Haar scale are already folded into wfs (per batch) in the glue.
    conv = jnp.dot(wfs_ref[0], slab, preferred_element_type=jnp.float32)   # (C, T)
    conv_ref[0] = conv

    # TODO(synk): stats stay sublane-major (2C, 1); lane-major accumulators (minor win
    # for small t_inner counts) would need an in-kernel sublane->lane relayout.
    s1 = jnp.sum(conv, axis=1, keepdims=True)                         # (C, 1)
    s2 = jnp.sum(conv * conv, axis=1, keepdims=True)                  # (C, 1)
    part = jnp.concatenate([s1, s2], axis=0)[None, None]              # (1, 1, 2C, 1)

    @pl.when(ti == 0)
    def _init():
        stats_ref[...] = part

    @pl.when(ti != 0)
    def _acc():
        stats_ref[...] += part


def _bn_relu_kernel(conv_ref, ab_ref, out_ref):
    """Pass 3: out = relu(conv * a + b), BN affine folded into (a, b); in-place."""
    a = ab_ref[0]                                                     # (C, 1)
    b = ab_ref[1]                                                     # (C, 1)
    out_ref[0] = jnp.maximum(conv_ref[0] * a + b, 0.0)


def _pick_tile_v(V, C, slab_bytes, budget_bytes=20 * 1024 * 1024):
    """Largest tile_v (multiple of 128, divisor of V, <= 2048 lanes) whose
    double-buffered per-step blocks fit the VMEM budget (v7x: 64 MiB total)."""
    fixed = 2 * (C * 8 * C * 4) + (64 << 10)          # wfs buffers + slack
    per_lane = 2 * (8 * C * slab_bytes + C * 4)       # in slab + conv out, x2 buffers
    max_tv = max(128, (budget_bytes - fixed) // per_lane)
    best = 128
    tv = 128
    while tv <= min(V, 2048) and tv <= max_tv:
        if V % tv == 0:
            best = tv
        tv += 128
    return best


def wavelet_channel_attention(x, params, *, tile_v=None, slab_dtype=jnp.float32):
    B, C, D, H, W = x.shape
    # TODO(synk): odd spatial sizes / non-Haar wavelets (pywt symmetric boundary
    # filtering) are not implemented.
    assert D % 2 == 0 and H % 2 == 0 and W % 2 == 0
    D2, H2, W2 = D // 2, H // 2, W // 2
    V = D2 * H2 * W2
    L = B * V
    K8 = 8 * C
    Ch = 7 * C
    f32 = jnp.float32
    slab_bytes = jnp.dtype(slab_dtype).itemsize

    # TODO(synk): V not a multiple of 128 would need lane padding; not implemented.
    assert V % 128 == 0, "per-batch output voxel count must be a multiple of 128"
    if tile_v is None:
        tile_v = _pick_tile_v(V, C, slab_bytes)
    assert V % tile_v == 0 and tile_v % 128 == 0
    nT = V // tile_v
    # Megacore (v7x: 2 TCs): when B is odd/small, split the V-tile axis into a
    # "parallel" outer and an "arbitrary" (accumulating) inner axis.
    n_to = 2 if (nT % 2 == 0 and B % 2 == 1) else 1
    n_ti = nT // n_to

    xf = x.astype(f32)
    xe = xf.reshape(B, C, D2, 2, H2, 2, W2, 2)

    # corner slab (B, 8, C, V): corner k = i*4 + j*2 + l, lane index = flat low-res voxel.
    # dtype cast (optionally bf16) is folded into this single materialization.
    xr = xe.transpose(0, 3, 5, 7, 1, 2, 4, 6).reshape(B, 8, C, V).astype(slab_dtype)

    # ------- glue: SE pool from corner sums (linearity: pool == butterfly(cornersum)) --
    cs = xe.sum(axis=(2, 4, 6)).reshape(B, C, 8)                          # (B, C, 8)
    hmat = jnp.asarray(_HMAT)
    pooled = jnp.sum(hmat[None, :, None, :] * cs[:, None, :, :], axis=-1)  # (B, 8, C)
    pooled_mean = pooled * (_HAAR_SCALE / V)                               # true subband means

    # ------- glue: squeeze-excite MLPs (tiny, off the Pallas/MXU path) ---------------
    w1l, w2l = params["w1_low"], params["w2_low"]
    w1h, w2h = params["w1_high"], params["w2_high"]

    att_low = jax.nn.sigmoid(jax.nn.relu(pooled_mean[:, 0] @ w1l.T) @ w2l.T)      # (B, C)
    y_high_t = pooled_mean[:, 1:].transpose(0, 2, 1).reshape(B, Ch)               # torch order
    att_high_t = jax.nn.sigmoid(jax.nn.relu(y_high_t @ w1h.T) @ w2h.T)            # (B, 7C)
    att_high = att_high_t.reshape(B, C, 7).transpose(0, 2, 1).reshape(B, Ch)      # kernel order
    scale = jnp.concatenate([att_low, att_high], axis=1) * _HAAR_SCALE            # (B, 8C)

    # fused 1x1-conv weight: columns permuted to subband-major order, then the sigmoid
    # attention + Haar scale folded in per batch.
    wf = params["wf"].astype(f32)
    wf_k = jnp.concatenate(
        [wf[:, :C],
         wf[:, C:].reshape(C, C, 7).transpose(0, 2, 1).reshape(C, Ch)], axis=1)   # (C, 8C)
    wfs = (wf_k[None, :, :] * scale[:, None, :]).astype(f32)                      # (B, C, 8C)

    cparams2 = pltpu.CompilerParams(
        dimension_semantics=("parallel", "parallel", "arbitrary"),
        vmem_limit_bytes=32 * 1024 * 1024)

    # ---------------- pass 2: fused butterfly + conv + BN statistics ----------------
    conv, stats = pl.pallas_call(
        _fused_conv_kernel,
        grid=(B, n_to, n_ti),
        in_specs=[
            pl.BlockSpec((1, 8, C, tile_v), lambda b, to, ti: (b, 0, 0, to * n_ti + ti)),
            pl.BlockSpec((1, C, K8), lambda b, to, ti: (b, 0, 0)),
        ],
        out_specs=(
            pl.BlockSpec((1, C, tile_v), lambda b, to, ti: (b, 0, to * n_ti + ti)),
            pl.BlockSpec((1, 1, 2 * C, 1), lambda b, to, ti: (b, to, 0, 0)),
        ),
        out_shape=(
            jax.ShapeDtypeStruct((B, C, V), f32),
            jax.ShapeDtypeStruct((B, n_to, 2 * C, 1), f32),
        ),
        compiler_params=cparams2,
        cost_estimate=pl.CostEstimate(
            flops=(24 + 4) * C * L + 2 * C * K8 * L, transcendentals=0,
            bytes_accessed=slab_bytes * K8 * L
            + 4 * (C * L + B * C * K8 + B * n_to * 2 * C)),
    )(xr, wfs)

    # ---------------- glue: BN batch stats -> per-channel affine ----------------
    totals = jnp.sum(stats, axis=(0, 1))[:, 0]        # (2C,)
    mean = totals[:C] / L
    var = jnp.maximum(totals[C:] / L - mean * mean, 0.0)   # biased, clamped (training BN)
    inv = jax.lax.rsqrt(var + BN_EPS)
    a = params["gamma"].astype(f32) * inv
    b = params["beta"].astype(f32) - mean * a
    # NOTE: the conv bias is intentionally dropped: training-mode BatchNorm subtracts
    # the per-channel batch mean, so a per-channel pre-BN bias cancels exactly.
    ab = jnp.stack([a, b], axis=0).reshape(2, C, 1).astype(f32)

    # ---------------- pass 3: BN apply + ReLU (in place over conv) ----------------
    out = pl.pallas_call(
        _bn_relu_kernel,
        grid=(B, nT),
        in_specs=[
            pl.BlockSpec((1, C, tile_v), lambda bb, t: (bb, 0, t)),
            pl.BlockSpec((2, C, 1), lambda bb, t: (0, 0, 0)),
        ],
        out_specs=pl.BlockSpec((1, C, tile_v), lambda bb, t: (bb, 0, t)),
        out_shape=jax.ShapeDtypeStruct((B, C, V), f32),
        input_output_aliases={0: 0},
        compiler_params=pltpu.CompilerParams(
            dimension_semantics=("parallel", "parallel"),
            vmem_limit_bytes=32 * 1024 * 1024),
        cost_estimate=pl.CostEstimate(
            flops=3 * C * L, transcendentals=0,
            bytes_accessed=4 * (2 * C * L + 2 * C)),
    )(conv, ab)

    # (B, C, V) layout makes this a free reshape - no output transpose.
    return out.reshape(B, C, D2, H2, W2)


def reference(x, params):
    """Pure-JAX reference reproducing the PyTorch forward semantics (incl. conv bias)."""
    B, C, D, H, W = x.shape
    D2, H2, W2 = D // 2, H // 2, W // 2
    xe = x.reshape(B, C, D2, 2, H2, 2, W2, 2)

    def subband(pattern):
        acc = 0.0
        for i in range(2):
            for j in range(2):
                for l in range(2):
                    s = 1.0
                    if pattern[0] == "d" and i == 1:
                        s = -s
                    if pattern[1] == "d" and j == 1:
                        s = -s
                    if pattern[2] == "d" and l == 1:
                        s = -s
                    acc = acc + s * xe[:, :, :, i, :, j, :, l]
        return acc * _HAAR_SCALE

    low = subband("aaa")
    high = jnp.stack([subband(p) for p in SUBBANDS[1:]], axis=2)
    high = high.reshape(B, C * 7, D2, H2, W2)

    def chan_att(f, w1, w2):
        y = f.mean(axis=(2, 3, 4))
        h = jax.nn.relu(y @ w1.T)
        a = jax.nn.sigmoid(h @ w2.T)
        return f * a[:, :, None, None, None]

    low = chan_att(low, params["w1_low"], params["w2_low"])
    high = chan_att(high, params["w1_high"], params["w2_high"])
    cat = jnp.concatenate([low, high], axis=1)
    conv = jnp.einsum("oi,bidhw->bodhw", params["wf"], cat) \
        + params["bias"][None, :, None, None, None]
    m = conv.mean(axis=(0, 2, 3, 4))
    v = ((conv - m[None, :, None, None, None]) ** 2).mean(axis=(0, 2, 3, 4))
    bn = (conv - m[None, :, None, None, None]) \
        * jax.lax.rsqrt(v + BN_EPS)[None, :, None, None, None]
    bn = bn * params["gamma"][None, :, None, None, None] \
        + params["beta"][None, :, None, None, None]
    return jax.nn.relu(bn)


if __name__ == "__main__":
    def make_params(key, C, reduction=16):
        hl = max(C // reduction, 1)
        Ch = 7 * C
        hh = max(Ch // reduction, 1)
        ks = jax.random.split(key, 8)
        return {
            "w1_low": 0.2 * jax.random.normal(ks[0], (hl, C), jnp.float32),
            "w2_low": 0.2 * jax.random.normal(ks[1], (C, hl), jnp.float32),
            "w1_high": 0.1 * jax.random.normal(ks[2], (hh, Ch), jnp.float32),
            "w2_high": 0.1 * jax.random.normal(ks[3], (Ch, hh), jnp.float32),
            "wf": 0.1 * jax.random.normal(ks[4], (C, C + Ch), jnp.float32),
            "bias": 0.1 * jax.random.normal(ks[5], (C,), jnp.float32),
            "gamma": 1.0 + 0.1 * jax.random.normal(ks[6], (C,), jnp.float32),
            "beta": 0.1 * jax.random.normal(ks[7], (C,), jnp.float32),
        }

    key = jax.random.PRNGKey(0)
    kp, k1, k2 = jax.random.split(key, 3)

    # case 1: B=2, f32 slab, tile_v=128 -> 4 V-tiles per batch (exercises the
    # t_inner accumulation path); strict tolerance.
    B, C, D, H, W = 2, 16, 16, 16, 16
    params = make_params(kp, C)
    x = jax.random.normal(k1, (B, C, D, H, W), jnp.float32)
    fwd = jax.jit(lambda xx: wavelet_channel_attention(
        xx, params, tile_v=128, slab_dtype=jnp.float32))
    out = jax.block_until_ready(fwd(x))
    assert out.shape == (B, C, D // 2, H // 2, W // 2)
    ref = reference(x, params)
    np.testing.assert_allclose(np.asarray(out), np.asarray(ref), rtol=2e-3, atol=2e-3)

    # case 2: B=1 (exercises the megacore t_outer="parallel" split) with a bf16 corner
    # slab (the v6e/v7x-targeted byte reduction).  Looser tolerance: bf16 slab storage
    # contributes ~5e-3 max error after BN normalization; structural bugs are O(1).
    B2, C2, D2_, H2_, W2_ = 1, 16, 16, 16, 32
    params2 = make_params(kp, C2)
    x2 = jax.random.normal(k2, (B2, C2, D2_, H2_, W2_), jnp.float32)
    fwd2 = jax.jit(lambda xx: wavelet_channel_attention(
        xx, params2, tile_v=256, slab_dtype=jnp.bfloat16))
    out2 = jax.block_until_ready(fwd2(x2))
    assert out2.shape == (B2, C2, D2_ // 2, H2_ // 2, W2_ // 2)
    ref2 = reference(x2, params2)
    np.testing.assert_allclose(np.asarray(out2), np.asarray(ref2), rtol=1e-2, atol=1e-2)

    print("KERNEL_OK")
</pallas_src>

<mosaic_0001>
module attributes {stable_mosaic.version = 11 : i64} {
  func.func @_fused_conv_kernel(%arg0: i32, %arg1: i32, %arg2: i32, %arg3: memref<1x8x16x128xf32, #tpu.memory_space<vmem>>, %arg4: memref<1x16x128xf32, #tpu.memory_space<vmem>>, %arg5: memref<1x16x128xf32, #tpu.memory_space<vmem>>, %arg6: memref<1x1x32x1xf32, #tpu.memory_space<vmem>>) attributes {dimension_semantics = [#tpu.dimension_semantics<parallel>, #tpu.dimension_semantics<parallel>, #tpu.dimension_semantics<arbitrary>], iteration_bounds = array<i64: 2, 1, 4>, scalar_prefetch = 0 : i64, scratch_operands = 0 : i64, tpu.core_type = #tpu.core_type<tc>, window_params = [{transform_indices = @transform_0, window_bounds = array<i64: 1, 8, 16, 128>}, {transform_indices = @transform_1, window_bounds = array<i64: 1, 16, 128>}, {transform_indices = @transform_2, window_bounds = array<i64: 1, 16, 128>}, {transform_indices = @transform_3, window_bounds = array<i64: 1, 1, 32, 1>}]} {
    %c0 = arith.constant 0 : index
    %c0_0 = arith.constant 0 : index
    %c0_1 = arith.constant 0 : index
    %c0_2 = arith.constant 0 : index
    %0 = vector.load %arg3[%c0, %c0_0, %c0_1, %c0_2] : memref<1x8x16x128xf32, #tpu.memory_space<vmem>>, vector<1x8x16x128xf32>
    %1 = vector.shape_cast %0 : vector<1x8x16x128xf32> to vector<8x16x128xf32>
    %2 = vector.extract_strided_slice %1 {offsets = [0, 0, 0], sizes = [1, 16, 128], strides = [1, 1, 1]} : vector<8x16x128xf32> to vector<1x16x128xf32>
    %3 = vector.shape_cast %2 : vector<1x16x128xf32> to vector<16x128xf32>
    %4 = vector.extract_strided_slice %1 {offsets = [1, 0, 0], sizes = [1, 16, 128], strides = [1, 1, 1]} : vector<8x16x128xf32> to vector<1x16x128xf32>
    %5 = vector.shape_cast %4 : vector<1x16x128xf32> to vector<16x128xf32>
    %6 = vector.extract_strided_slice %1 {offsets = [2, 0, 0], sizes = [1, 16, 128], strides = [1, 1, 1]} : vector<8x16x128xf32> to vector<1x16x128xf32>
    %7 = vector.shape_cast %6 : vector<1x16x128xf32> to vector<16x128xf32>
    %8 = vector.extract_strided_slice %1 {offsets = [3, 0, 0], sizes = [1, 16, 128], strides = [1, 1, 1]} : vector<8x16x128xf32> to vector<1x16x128xf32>
    %9 = vector.shape_cast %8 : vector<1x16x128xf32> to vector<16x128xf32>
    %10 = vector.extract_strided_slice %1 {offsets = [4, 0, 0], sizes = [1, 16, 128], strides = [1, 1, 1]} : vector<8x16x128xf32> to vector<1x16x128xf32>
    %11 = vector.shape_cast %10 : vector<1x16x128xf32> to vector<16x128xf32>
    %12 = vector.extract_strided_slice %1 {offsets = [5, 0, 0], sizes = [1, 16, 128], strides = [1, 1, 1]} : vector<8x16x128xf32> to vector<1x16x128xf32>
    %13 = vector.shape_cast %12 : vector<1x16x128xf32> to vector<16x128xf32>
    %14 = vector.extract_strided_slice %1 {offsets = [6, 0, 0], sizes = [1, 16, 128], strides = [1, 1, 1]} : vector<8x16x128xf32> to vector<1x16x128xf32>
    %15 = vector.shape_cast %14 : vector<1x16x128xf32> to vector<16x128xf32>
    %16 = vector.extract_strided_slice %1 {offsets = [7, 0, 0], sizes = [1, 16, 128], strides = [1, 1, 1]} : vector<8x16x128xf32> to vector<1x16x128xf32>
    %17 = vector.shape_cast %16 : vector<1x16x128xf32> to vector<16x128xf32>
    %18 = arith.addf %3, %5 : vector<16x128xf32>
    %19 = arith.subf %3, %5 : vector<16x128xf32>
    %20 = arith.addf %7, %9 : vector<16x128xf32>
    %21 = arith.subf %7, %9 : vector<16x128xf32>
    %22 = arith.addf %11, %13 : vector<16x128xf32>
    %23 = arith.subf %11, %13 : vector<16x128xf32>
    %24 = arith.addf %15, %17 : vector<16x128xf32>
    %25 = arith.subf %15, %17 : vector<16x128xf32>
    %26 = arith.addf %18, %20 : vector<16x128xf32>
    %27 = arith.subf %18, %20 : vector<16x128xf32>
    %28 = arith.addf %19, %21 : vector<16x128xf32>
    %29 = arith.subf %19, %21 : vector<16x128xf32>
    %30 = arith.addf %22, %24 : vector<16x128xf32>
    %31 = arith.subf %22, %24 : vector<16x128xf32>
    %32 = arith.addf %23, %25 : vector<16x128xf32>
    %33 = arith.subf %23, %25 : vector<16x128xf32>
    %34 = arith.addf %26, %30 : vector<16x128xf32>
    %35 = arith.addf %28, %32 : vector<16x128xf32>
    %36 = arith.addf %27, %31 : vector<16x128xf32>
    %37 = arith.addf %29, %33 : vector<16x128xf32>
    %38 = arith.subf %26, %30 : vector<16x128xf32>
    %39 = arith.subf %28, %32 : vector<16x128xf32>
    %40 = arith.subf %27, %31 : vector<16x128xf32>
    %41 = arith.subf %29, %33 : vector<16x128xf32>
    %42 = tpu.concatenate %34, %35, %36, %37, %38, %39, %40, %41 in 0 : vector<16x128xf32>, vector<16x128xf32>, vector<16x128xf32>, vector<16x128xf32>, vector<16x128xf32>, vector<16x128xf32>, vector<16x128xf32>, vector<16x128xf32> -> vector<128x128xf32>
    %c0_3 = arith.constant 0 : index
    %c0_4 = arith.constant 0 : index
    %c0_5 = arith.constant 0 : index
    %43 = vector.load %arg4[%c0_3, %c0_4, %c0_5] : memref<1x16x128xf32, #tpu.memory_space<vmem>>, vector<1x16x128xf32>
    %44 = vector.shape_cast %43 : vector<1x16x128xf32> to vector<16x128xf32>
    %cst = arith.constant dense<0.000000e+00> : vector<16x128xf32>
    %45 = tpu.matmul %44, %42, %cst {dimension_numbers = #tpu.dot_dimension_numbers<[1], [0], [0], [1], [0, 0, 1, 1], [], []>} : vector<16x128xf32>, vector<128x128xf32>, vector<16x128xf32> -> vector<16x128xf32>
    %c0_6 = arith.constant 0 : index
    %c0_7 = arith.constant 0 : index
    %c0_8 = arith.constant 0 : index
    %46 = vector.load %arg5[%c0_6, %c0_7, %c0_8] : memref<1x16x128xf32, #tpu.memory_space<vmem>>, vector<1x16x128xf32>
    %47 = vector.shape_cast %46 : vector<1x16x128xf32> to vector<16x128xf32>
    %48 = vector.shape_cast %45 : vector<16x128xf32> to vector<1x16x128xf32>
    tpu.vector_store %arg5[%c0_6, %c0_7, %c0_8], %48 {strides = array<i32>} : memref<1x16x128xf32, #tpu.memory_space<vmem>>, vector<1x16x128xf32>,
    %cst_9 = arith.constant dense<0.000000e+00> : vector<16xf32>
    %49 = vector.multi_reduction <add>, %45, %cst_9 [1] : vector<16x128xf32> to vector<16xf32>
    %50 = vector.shape_cast %49 : vector<16xf32> to vector<16x1xf32>
    %51 = arith.mulf %45, %45 : vector<16x128xf32>
    %cst_10 = arith.constant dense<0.000000e+00> : vector<16xf32>
    %52 = vector.multi_reduction <add>, %51, %cst_10 [1] : vector<16x128xf32> to vector<16xf32>
    %53 = vector.shape_cast %52 : vector<16xf32> to vector<16x1xf32>
    %54 = tpu.concatenate %50, %53 in 0 : vector<16x1xf32>, vector<16x1xf32> -> vector<32x1xf32>
    %55 = vector.shape_cast %54 : vector<32x1xf32> to vector<1x1x32x1xf32>
    %c0_i32 = arith.constant 0 : i32
    %56 = arith.cmpi eq, %arg2, %c0_i32 : i32
    %57 = arith.extui %56 : i1 to i32
    %c0_i32_11 = arith.constant 0 : i32
    %58 = arith.cmpi ne, %57, %c0_i32_11 : i32
    scf.if %58 {
      %c0_14 = arith.constant 0 : index
      %c0_15 = arith.constant 0 : index
      %c0_16 = arith.constant 0 : index
      %c0_17 = arith.constant 0 : index
      %62 = vector.load %arg6[%c0_14, %c0_15, %c0_16, %c0_17] : memref<1x1x32x1xf32, #tpu.memory_space<vmem>>, vector<1x1x32x1xf32>
      tpu.vector_store %arg6[%c0_14, %c0_15, %c0_16, %c0_17], %55 {strides = array<i32>} : memref<1x1x32x1xf32, #tpu.memory_space<vmem>>, vector<1x1x32x1xf32>,
    } else {
    }
    %c0_i32_12 = arith.constant 0 : i32
    %59 = arith.cmpi ne, %arg2, %c0_i32_12 : i32
    %60 = arith.extui %59 : i1 to i32
    %c0_i32_13 = arith.constant 0 : i32
    %61 = arith.cmpi ne, %60, %c0_i32_13 : i32
    scf.if %61 {
      %c0_14 = arith.constant 0 : index
      %c0_15 = arith.constant 0 : index
      %c0_16 = arith.constant 0 : index
      %c0_17 = arith.constant 0 : index
      %62 = vector.load %arg6[%c0_14, %c0_15, %c0_16, %c0_17] : memref<1x1x32x1xf32, #tpu.memory_space<vmem>>, vector<1x1x32x1xf32>
      %63 = arith.addf %62, %55 : vector<1x1x32x1xf32>
      %c0_18 = arith.constant 0 : index
      %c0_19 = arith.constant 0 : index
      %c0_20 = arith.constant 0 : index
      %c0_21 = arith.constant 0 : index
      %64 = vector.load %arg6[%c0_18, %c0_19, %c0_20, %c0_21] : memref<1x1x32x1xf32, #tpu.memory_space<vmem>>, vector<1x1x32x1xf32>
      tpu.vector_store %arg6[%c0_18, %c0_19, %c0_20, %c0_21], %63 {strides = array<i32>} : memref<1x1x32x1xf32, #tpu.memory_space<vmem>>, vector<1x1x32x1xf32>,
    } else {
    }
    return
  }
  func.func @transform_0(%arg0: i32, %arg1: i32, %arg2: i32) -> (i32, i32, i32, i32) {
    %c4_i32 = arith.constant 4 : i32
    %0 = arith.muli %arg1, %c4_i32 : i32
    %1 = arith.addi %0, %arg2 : i32
    %c0_i32 = arith.constant 0 : i32
    %c0_i32_0 = arith.constant 0 : i32
    %c0_i32_1 = arith.constant 0 : i32
    return %arg0, %c0_i32, %c0_i32_0, %1 : i32, i32, i32, i32
  }
  func.func @transform_1(%arg0: i32, %arg1: i32, %arg2: i32) -> (i32, i32, i32) {
    %c0_i32 = arith.constant 0 : i32
    %c0_i32_0 = arith.constant 0 : i32
    %c0_i32_1 = arith.constant 0 : i32
    return %arg0, %c0_i32, %c0_i32_0 : i32, i32, i32
  }
  func.func @transform_2(%arg0: i32, %arg1: i32, %arg2: i32) -> (i32, i32, i32) {
    %c4_i32 = arith.constant 4 : i32
    %0 = arith.muli %arg1, %c4_i32 : i32
    %1 = arith.addi %0, %arg2 : i32
    %c0_i32 = arith.constant 0 : i32
    %c0_i32_0 = arith.constant 0 : i32
    return %arg0, %c0_i32, %1 : i32, i32, i32
  }
  func.func @transform_3(%arg0: i32, %arg1: i32, %arg2: i32) -> (i32, i32, i32, i32) {
    %c0_i32 = arith.constant 0 : i32
    %c0_i32_0 = arith.constant 0 : i32
    %c0_i32_1 = arith.constant 0 : i32
    return %arg0, %arg1, %c0_i32, %c0_i32_0 : i32, i32, i32, i32
  }
}

module attributes {stable_mosaic.version = 11 : i64} {
  func.func @_bn_relu_kernel(%arg0: i32, %arg1: i32, %arg2: memref<1x16x128xf32, #tpu.memory_space<vmem>>, %arg3: memref<2x16x1xf32, #tpu.memory_space<vmem>>, %arg4: memref<1x16x128xf32, #tpu.memory_space<vmem>>) attributes {dimension_semantics = [#tpu.dimension_semantics<parallel>, #tpu.dimension_semantics<parallel>], iteration_bounds = array<i64: 2, 4>, scalar_prefetch = 0 : i64, scratch_operands = 0 : i64, tpu.core_type = #tpu.core_type<tc>, window_params = [{transform_indices = @transform_0, window_bounds = array<i64: 1, 16, 128>}, {pipeline_mode = #tpu.pipeline_mode<synchronous>, transform_indices = @transform_1, window_bounds = array<i64: 2, 16, 1>}, {transform_indices = @transform_2, window_bounds = array<i64: 1, 16, 128>}]} {
    %c0 = arith.constant 0 : index
    %c0_0 = arith.constant 0 : index
    %c0_1 = arith.constant 0 : index
    %0 = vector.load %arg3[%c0, %c0_0, %c0_1] : memref<2x16x1xf32, #tpu.memory_space<vmem>>, vector<1x16x1xf32>
    %1 = vector.shape_cast %0 : vector<1x16x1xf32> to vector<16x1xf32>
    %c1 = arith.constant 1 : index
    %c0_2 = arith.constant 0 : index
    %c0_3 = arith.constant 0 : index
    %2 = vector.load %arg3[%c1, %c0_2, %c0_3] : memref<2x16x1xf32, #tpu.memory_space<vmem>>, vector<1x16x1xf32>
    %3 = vector.shape_cast %2 : vector<1x16x1xf32> to vector<16x1xf32>
    %c0_4 = arith.constant 0 : index
    %c0_5 = arith.constant 0 : index
    %c0_6 = arith.constant 0 : index
    %4 = vector.load %arg2[%c0_4, %c0_5, %c0_6] : memref<1x16x128xf32, #tpu.memory_space<vmem>>, vector<1x16x128xf32>
    %5 = vector.shape_cast %4 : vector<1x16x128xf32> to vector<16x128xf32>
    %6 = vector.broadcast %1 : vector<16x1xf32> to vector<16x128xf32>
    %7 = arith.mulf %5, %6 : vector<16x128xf32>
    %8 = vector.broadcast %3 : vector<16x1xf32> to vector<16x128xf32>
    %9 = arith.addf %7, %8 : vector<16x128xf32>
    %cst = arith.constant 0.000000e+00 : f32
    %10 = vector.broadcast %cst : f32 to vector<16x128xf32>
    %11 = arith.maximumf %9, %10 : vector<16x128xf32>
    %c0_7 = arith.constant 0 : index
    %c0_8 = arith.constant 0 : index
    %c0_9 = arith.constant 0 : index
    %12 = vector.load %arg4[%c0_7, %c0_8, %c0_9] : memref<1x16x128xf32, #tpu.memory_space<vmem>>, vector<1x16x128xf32>
    %13 = vector.shape_cast %12 : vector<1x16x128xf32> to vector<16x128xf32>
    %14 = vector.shape_cast %11 : vector<16x128xf32> to vector<1x16x128xf32>
    tpu.vector_store %arg4[%c0_7, %c0_8, %c0_9], %14 {strides = array<i32>} : memref<1x16x128xf32, #tpu.memory_space<vmem>>, vector<1x16x128xf32>,
    return
  }
  func.func @transform_0(%arg0: i32, %arg1: i32) -> (i32, i32, i32) {
    %c0_i32 = arith.constant 0 : i32
    %c0_i32_0 = arith.constant 0 : i32
    return %arg0, %c0_i32, %arg1 : i32, i32, i32
  }
  func.func @transform_1(%arg0: i32, %arg1: i32) -> (i32, i32, i32) {
    %c0_i32 = arith.constant 0 : i32
    %c0_i32_0 = arith.constant 0 : i32
    %c0_i32_1 = arith.constant 0 : i32
    %c0_i32_2 = arith.constant 0 : i32
    return %c0_i32, %c0_i32_0, %c0_i32_1 : i32, i32, i32
  }
  func.func @transform_2(%arg0: i32, %arg1: i32) -> (i32, i32, i32) {
    %c0_i32 = arith.constant 0 : i32
    %c0_i32_0 = arith.constant 0 : i32
    return %arg0, %c0_i32, %arg1 : i32, i32, i32
  }
}

</mosaic_0001>

<bundles_post_ra>
// kernel: _lambda_.3
= control target key start
LH: loop header
LB: loop body
LE: loop exit
PB: predicated region body
PF: predicated region fallthrough
CT: control target
= control target key end

     0   :  { %s498_s9 = smov 0   ;;  %s500_s10 = smov 0   ;;  %s606_s0 = inlined_call_operand.vmem [shape: f32[2,16,512], index: 0, kind: input, shape index: {}, may-alias: {0,2}]   ;;  %s607_s1 = inlined_call_operand.vmem [shape: f32[2,16,1], index: 1, kind: input, shape index: {}]   ;;  %s608_s2 = inlined_call_operand.vmem [shape: f32[2,16,512], index: 2, kind: output, shape index: {}, may-alias: {0,2}]  }
   0x1   :  { %s502_s11 = smov 0   ;;  %s504_s12 = smov 0  }
   0x2   :  { %s506_s13 = smov 0   ;;  %s508_s14 = smov 0  }
   0x3   :  { %s510_s15 = smov 0  }
   0x4 LB: > { %s21_s16 = sadd.s32 1, %s472_s13  ;;  %s24_s17 = sadd.s32 1, %s476_s14  ;;  %s480_s15 = sphi %s510_s15, %s12_s15   ;;  %s476_s14 = sphi %s508_s14, %s615_s14   ;;  %s472_s13 = sphi %s506_s13, %s614_s13   ;;  %s468_s12 = sphi %s504_s12, %s613_s12   ;;  %s464_s11 = sphi %s502_s11, %s612_s11   ;;  %s460_s10 = sphi %s500_s10, %s611_s10   ;;  %s456_s9 = sphi %s498_s9, %s610_s9  }
   0x5   : > { %p22_p0 = scmp.ge.s32.totalorder %s21_s16, 4  ;;  %s350_s18 = sadd.s32 4294967295, %s480_s15  }
   0x6   : > { %p40_p1 = scmp.ne.s32.totalorder %s460_s10, %s456_s9  ;;  %p41_p2 = scmp.eq.s32.totalorder %s480_s15, 0 }
   0x7   : > { %s617_s16 = smov (%p22_p0, %s21_s16), 0  ;;  %s619_s17 = smov (!%p22_p0, %s24_s17), %s476_s14 }
   0x8   : > { %p26_p3 = scmp.ge.s32.totalorder %s619_s17, 2  ;;  %p93_p4 = scmp.eq.s32.totalorder %s350_s18, 7 }
   0x9   : > { %s29_s19 = ssub.s32 %s472_s13, %s617_s16  ;;  %p42_p5 = por %p41_p2, %p40_p1 }
   0xa   : > { %s621_s17 = smov (%p26_p3, %s619_s17), 0  ;;  %p546_p6 = por %p93_p4, %p40_p1 }
   0xb   : > { %s28_s21 = ssub.s32 %s476_s14, %s621_s17  ;;  %s33_s23 = sadd.s32 1, %s460_s10 }
   0xc   : > { %s30_s22 = sor.u32 %s29_s19, %s28_s21  ;;  %p353_p8 = scmp.ge.s32.totalorder %s480_s15, 8 }
   0xd   : > { %p31_p7 = scmp.eq.s32.totalorder %s30_s22, 0 }
   0xe   : > { %118 = sbr.rel (%p353_p8) target bundleno = 27 (0x1b), region = 20 }
   0xf   : > { %s554_s24 = scalar_select %p31_p7, %s460_s10, %s33_s23  }
  0x13   : > { %121 = sbr.rel (!%p42_p5) target bundleno = 27 (0x1b), region = 24  ;;  %s123_s25 = sand.u32 (%p42_p5), 1, %s460_s10  }
  0x14   : > { %s355_s26 = sshll.u32 (%p42_p5), %s476_s14, 3  ;;  %s354_s27 = sshll.u32 (%p42_p5), %s123_s25, 4 }
  0x15   : > { %s127_s28 = sadd.s32 (%p42_p5), %s472_s13, %s355_s26  ;;  %s125_s5 = scalar_lea.vmem (%p42_p5), [#allocation2], %s354_s27 }
  0x16   : > { %s356_s29 = sshll.u32 (%p42_p5), %s127_s28, 3 }
  0x17   : > { %s129_s4 = scalar_lea.vmem (%p42_p5), %s606_s0, %s356_s29 }
  0x18   : > { %v160_v0 = vld [vmem:[%s129_s4] sm:$0xff] }
  0x19   : > { %v162_v1 = vld [vmem:[%s129_s4 + $0x20] sm:$0xff]  ;;  %161 = vst [vmem:[%s125_s5] sm:$0xff] %v160_v0 }
  0x1a   : > { %163 = vst [vmem:[%s125_s5 + $0x8] sm:$0xff] %v162_v1 }
  0x1b PF: > { %p357_p9 = scmp.ge.s32.totalorder %s480_s15, 1  ;;  %p168_p10 = scmp.lt.s32.totalorder %s480_s15, 9 }
  0x1d   : > { %p169_p11 = pnand %p357_p9, %p168_p10 }
  0x1e   : > { %s175_s25 = sand.u32 (!%p169_p11), 1, %s456_s9  }
  0x1f   : > { %172 = sbr.rel (%p169_p11) target bundleno = 181 (0xb5), region = 62  ;;  %s358_s26 = sshll.u32 (!%p169_p11), %s175_s25, 4 }
  0x20   : > { %s177_s27 = scalar_lea.vmem (!%p169_p11), [#allocation2], %s358_s26  ;;  %s194_s28 = scalar_lea.vmem (!%p169_p11), [#allocation3], %s358_s26 }
  0x24   : > { %v360_v2 = vld [vmem:[%s607_s1 + $0x10] sm:$0xff]  ;;  %v195_v3 = vld [vmem:[%s607_s1] sm:$0xff]  ;;  %v482_v4 = vmov 0   ;;  %v361_v5 = vld [vmem:[%s607_s1 + $0x18] sm:$0xff]  ;;  %s363_s9 = sshll.u32 (%p546_p6), %s468_s12, 3 }
  0x25   : > { %425 = vset.pattern.permute.xlu1 %v482_v4  ;;  %424 = vset.pattern.permute.xlu0 %v482_v4  ;;  %v196_v6 = vld [vmem:[%s607_s1 + $0x8] sm:$0xff]  ;;  %v200_v7 = vld [vmem:[%s177_s27] sm:$0xff]  ;;  %s238_s29 = sadd.s32 (%p546_p6), %s464_s11, %s363_s9 }
  0x26   : > { %216 = vperm.xlu1 %425, %v360_v2   ;;  %204 = vperm.xlu0 %424, %v195_v3   ;;  %v201_v11 = vld [vmem:[%s177_s27 + $0x8] sm:$0xff]  ;;  %s364_s30 = sshll.u32 (%p546_p6), %s238_s29, 3 }
  0x27   : > { %s240_s5 = scalar_lea.vmem (%p546_p6), %s608_s2, %s364_s30 }
  0x2a   : > { %221 = vperm.xlu1 %425, %v361_v5   ;;  %209 = vperm.xlu0 %424, %v196_v6  }
  0xa1   : > { %v217_v8 = vpop.permute.xlu1 %216  ;;  %v205_v9 = vpop.permute.xlu0 %204 }
  0xa2   : > { %v212_v10 = vmul.f32 %v205_v9, %v200_v7 }
  0xa4   : > { %v224_v12 = vadd.f32 %v217_v8, %v212_v10 }
  0xa5   : > { %v210_v13 = vpop.permute.xlu0 %209  ;;  %v222_v16 = vpop.permute.xlu1 %221 }
  0xa6   : > { %v226_v14 = vmax.f32 %v224_v12, 0.0  ;;  %v213_v15 = vmul.f32 %v210_v13, %v201_v11 }
  0xa8   : > { %228 = vst [vmem:[%s194_s28] sm:$0xff] %v226_v14  ;;  %v225_v17 = vadd.f32 %v222_v16, %v213_v15  ;;  %236 = sbr.rel (!%p546_p6) target bundleno = 181 (0xb5), region = 70 }
  0xaa   : > { %v227_v18 = vmax.f32 %v225_v17, 0.0 }
  0xac   : > { %229 = vst [vmem:[%s194_s28 + $0x8] sm:$0xff] %v227_v18 }
  0xaf   : > { %v271_v19 = vld [vmem:[%s194_s28] sm:$0xff] }
  0xb0   : > { %272 = vst [vmem:[%s240_s5] sm:$0xff] %v271_v19 }
  0xb3   : > { %v273_v20 = vld [vmem:[%s194_s28 + $0x8] sm:$0xff] }
  0xb4   : > { %274 = vst [vmem:[%s240_s5 + $0x20] sm:$0xff] %v273_v20 }
  0xb5 PF: > { %s12_s15 = sadd.s32 1, %s480_s15   ;;  %s610_s9 = smov %s460_s10 }
  0xb6   : > { %p9_p12 = scmp.ge.s32.totalorder %s12_s15, 10   ;;  %s611_s10 = smov %s554_s24 }
  0xb7   : > { %s612_s11 = smov %s472_s13  ;;  %s613_s12 = smov %s476_s14 }
  0xb8   : > { %s614_s13 = smov %s617_s16  ;;  %s615_s14 = smov %s621_s17 }
  0xb9   :  { %11 = sbr.rel (!%p9_p12) target bundleno = 4 (0x4), region = 140 }

// kernel: _lambda_.2
= control target key start
LH: loop header
LB: loop body
LE: loop exit
PB: predicated region body
PF: predicated region fallthrough
CT: control target
= control target key end

     0   :  { %s923_s12 = smov 0   ;;  %s925_s13 = smov 0   ;;  %s1093_s0 = inlined_call_operand.vmem [shape: f32[2,8,16,512], index: 0, kind: input, shape index: {}]   ;;  %s1094_s1 = inlined_call_operand.vmem [shape: f32[2,16,128], index: 1, kind: input, shape index: {}]   ;;  %s1095_s2 = inlined_call_operand.vmem [shape: f32[2,16,512], index: 2, kind: output, shape index: {0}]   ;;  %s1096_s3 = inlined_call_operand.vmem [shape: f32[2,1,32,1], index: 3, kind: output, shape index: {1}]  }
   0x1   :  { %s927_s14 = smov 0   ;;  %s929_s15 = smov 0  }
   0x2   :  { %s931_s16 = smov 0   ;;  %s933_s17 = smov 0  }
   0x3   :  { %s935_s18 = smov 0  }
   0x4 LB: > { %s26_s19 = sadd.s32 1, %s893_s16  ;;  %s33_s20 = sadd.s32 1, %s897_s17  ;;  %s901_s18 = sphi %s935_s18, %s14_s18   ;;  %s897_s17 = sphi %s933_s17, %s1103_s17   ;;  %s893_s16 = sphi %s931_s16, %s1102_s16   ;;  %s889_s15 = sphi %s929_s15, %s1101_s15   ;;  %s885_s14 = sphi %s927_s14, %s1100_s14   ;;  %s881_s13 = sphi %s925_s13, %s1099_s13   ;;  %s877_s12 = sphi %s923_s12, %s1098_s12  }
   0x5   : > { %p27_p0 = scmp.ge.s32.totalorder %s26_s19, 4  ;;  %s715_s21 = sadd.s32 4294967295, %s901_s18  }
   0x6   : > { %p53_p1 = scmp.ne.s32.totalorder %s881_s13, %s877_s12  ;;  %p54_p2 = scmp.eq.s32.totalorder %s901_s18, 0 }
   0x7   : > { %s1105_s19 = smov (%p27_p0, %s26_s19), 0  ;;  %s1107_s20 = smov (!%p27_p0, %s33_s20), %s897_s17 }
   0x8   : > { %p35_p3 = scmp.ge.s32.totalorder %s1107_s20, 2  ;;  %p115_p4 = scmp.eq.s32.totalorder %s715_s21, 7 }
   0x9   : > { %s42_s22 = ssub.s32 %s893_s16, %s1105_s19  ;;  %p55_p5 = por %p54_p2, %p53_p1 }
   0xa   : > { %s1109_s20 = smov (%p35_p3, %s1107_s20), 0  ;;  %p971_p6 = por %p115_p4, %p53_p1 }
   0xb   : > { %s41_s24 = ssub.s32 %s897_s17, %s1109_s20  ;;  %s46_s26 = sadd.s32 1, %s881_s13 }
   0xc   : > { %s43_s25 = sor.u32 %s42_s22, %s41_s24  ;;  %p718_p8 = scmp.ge.s32.totalorder %s901_s18, 8 }
   0xd   : > { %p44_p7 = scmp.eq.s32.totalorder %s43_s25, 0 }
   0xe   : > { %165 = sbr.rel (%p718_p8) target bundleno = 41 (0x29), region = 16 }
   0xf   : > { %s979_s27 = scalar_select %p44_p7, %s881_s13, %s46_s26  }
  0x13   : > { %168 = sbr.rel (!%p55_p5) target bundleno = 41 (0x29), region = 20  ;;  %s170_s28 = sand.u32 (%p55_p5), 1, %s881_s13  }
  0x14   : > { %s720_s29 = sshll.u32 (%p55_p5), %s897_s17, 6  ;;  %s719_s30 = sshll.u32 (%p55_p5), %s170_s28, 7 }
  0x15   : > { %s176_s4 = sadd.s32 (%p55_p5), %s893_s16, %s720_s29  ;;  %s172_s9 = scalar_lea.vmem (%p55_p5), [#allocation2], %s719_s30 }
  0x16   : > { %s721_s5 = sshll.u32 (%p55_p5), %s176_s4, 3 }
  0x17   : > { %s988_s8 = scalar_lea.vmem (%p55_p5), %s1093_s0, %s721_s5 }
  0x18   : > { %v237_v0 = vld [vmem:[%s988_s8] sm:$0xff] }
  0x19   : > { %v239_v1 = vld [vmem:[%s988_s8 + $0x20] sm:$0xff]  ;;  %238 = vst [vmem:[%s172_s9] sm:$0xff] %v237_v0 }
  0x1a   : > { %v241_v2 = vld [vmem:[%s988_s8 + $0x40] sm:$0xff]  ;;  %240 = vst [vmem:[%s172_s9 + $0x8] sm:$0xff] %v239_v1 }
  0x1b   : > { %242 = vst [vmem:[%s172_s9 + $0x10] sm:$0xff] %v241_v2  ;;  %v243_v3 = vld [vmem:[%s988_s8 + $0x60] sm:$0xff] }
  0x1c   : > { %v245_v4 = vld [vmem:[%s988_s8 + $0x80] sm:$0xff]  ;;  %244 = vst [vmem:[%s172_s9 + $0x18] sm:$0xff] %v243_v3 }
  0x1d   : > { %v247_v5 = vld [vmem:[%s988_s8 + $0xa0] sm:$0xff]  ;;  %246 = vst [vmem:[%s172_s9 + $0x20] sm:$0xff] %v245_v4 }
  0x1e   : > { %248 = vst [vmem:[%s172_s9 + $0x28] sm:$0xff] %v247_v5  ;;  %v249_v6 = vld [vmem:[%s988_s8 + $0xc0] sm:$0xff] }
  0x1f   : > { %v251_v7 = vld [vmem:[%s988_s8 + $0xe0] sm:$0xff]  ;;  %250 = vst [vmem:[%s172_s9 + $0x30] sm:$0xff] %v249_v6 }
  0x20   : > { %v253_v8 = vld [vmem:[%s988_s8 + $0x100] sm:$0xff]  ;;  %252 = vst [vmem:[%s172_s9 + $0x38] sm:$0xff] %v251_v7 }
  0x21   : > { %254 = vst [vmem:[%s172_s9 + $0x40] sm:$0xff] %v253_v8  ;;  %v255_v9 = vld [vmem:[%s988_s8 + $0x120] sm:$0xff] }
  0x22   : > { %v257_v10 = vld [vmem:[%s988_s8 + $0x140] sm:$0xff]  ;;  %256 = vst [vmem:[%s172_s9 + $0x48] sm:$0xff] %v255_v9 }
  0x23   : > { %v259_v11 = vld [vmem:[%s988_s8 + $0x160] sm:$0xff]  ;;  %258 = vst [vmem:[%s172_s9 + $0x50] sm:$0xff] %v257_v10 }
  0x24   : > { %260 = vst [vmem:[%s172_s9 + $0x58] sm:$0xff] %v259_v11  ;;  %v261_v12 = vld [vmem:[%s988_s8 + $0x180] sm:$0xff] }
  0x25   : > { %v263_v13 = vld [vmem:[%s988_s8 + $0x1a0] sm:$0xff]  ;;  %262 = vst [vmem:[%s172_s9 + $0x60] sm:$0xff] %v261_v12 }
  0x26   : > { %v265_v14 = vld [vmem:[%s988_s8 + $0x1c0] sm:$0xff]  ;;  %264 = vst [vmem:[%s172_s9 + $0x68] sm:$0xff] %v263_v13 }
  0x27   : > { %266 = vst [vmem:[%s172_s9 + $0x70] sm:$0xff] %v265_v14  ;;  %v267_v15 = vld [vmem:[%s988_s8 + $0x1e0] sm:$0xff] }
  0x28   : > { %268 = vst [vmem:[%s172_s9 + $0x78] sm:$0xff] %v267_v15 }
  0x29 PF: > { %p722_p9 = scmp.ge.s32.totalorder %s901_s18, 1  ;;  %p281_p10 = scmp.lt.s32.totalorder %s901_s18, 9 }
  0x2b   : > { %p282_p11 = pnand %p722_p9, %p281_p10 }
  0x2c   : > { %s288_s10 = sand.u32 (!%p282_p11), 1, %s877_s12   ;;  %p326_p12 = scmp.lt.s32.totalorder (!%p282_p11), %s889_s15, 1 }
  0x2d   : > { %285 = sbr.rel (%p282_p11) target bundleno = 451 (0x1c3), region = 62  ;;  %s723_s11 = sshll.u32 (!%p282_p11), %s288_s10, 7 }
  0x2e   : > { %s1012_s21 = scalar_lea.vmem (!%p282_p11), [#allocation2], %s723_s11  ;;  %s724_s6 = sshll.u32 (!%p282_p11), %s288_s10, 4 }
  0x2f   : > { %s1045_s7 = scalar_lea.vmem (!%p282_p11), [#allocation3], %s724_s6  ;;  %p729_p13 = scmp.ne.s32.totalorder (!%p282_p11), %s885_s14, 0 }
  0x32   : > { %v343_v16 = vld [vmem:[%s1012_s21 + $0x8] sm:$0xff]  ;;  %v345_v17 = vld [vmem:[%s1012_s21 + $0x18] sm:$0xff]  ;;  %s327_s22 = scalar_select %p326_p12, %s889_s15, 1  ;;  %v342_v30 = vld [vmem:[%s1012_s21] sm:$0xff] }
  0x33   : > { %v347_v18 = vld [vmem:[%s1012_s21 + $0x28] sm:$0xff]  ;;  %v349_v19 = vld [vmem:[%s1012_s21 + $0x38] sm:$0xff]  ;;  %v359_v22 = vadd.f32 %v345_v17, %v343_v16  ;;  %v361_v23 = vsub.f32 %v343_v16, %v345_v17  ;;  %v344_v33 = vld [vmem:[%s1012_s21 + $0x10] sm:$0xff] }
  0x34   : > { %v351_v20 = vld [vmem:[%s1012_s21 + $0x48] sm:$0xff]  ;;  %v353_v21 = vld [vmem:[%s1012_s21 + $0x58] sm:$0xff]  ;;  %v363_v26 = vadd.f32 %v349_v19, %v347_v18  ;;  %v365_v27 = vsub.f32 %v347_v18, %v349_v19  ;;  %s736_s24 = sshll.u32 %s327_s22, 4  ;;  %s737_s25 = sshll.u32 %s327_s22, 5  ;;  %v346_v34 = vld [vmem:[%s1012_s21 + $0x20] sm:$0xff]  ;;  %v360_v40 = vsub.f32 %v342_v30, %v344_v33  ;;  %v358_v47 = vadd.f32 %v344_v33, %v342_v30 }
  0x35   : > { %v355_v24 = vld [vmem:[%s1012_s21 + $0x68] sm:$0xff]  ;;  %v357_v25 = vld [vmem:[%s1012_s21 + $0x78] sm:$0xff]  ;;  %v367_v28 = vadd.f32 %v353_v21, %v351_v20  ;;  %v369_v29 = vsub.f32 %v351_v20, %v353_v21  ;;  %v348_v35 = vld [vmem:[%s1012_s21 + $0x30] sm:$0xff]  ;;  %s1030_s29 = scalar_lea.vmem %s1094_s1, %s736_s24  ;;  %s1035_s5 = scalar_lea.vmem %s1096_s3, %s737_s25 }
  0x36   : > { %v371_v31 = vadd.f32 %v357_v25, %v355_v24  ;;  %v373_v32 = vsub.f32 %v355_v24, %v357_v25  ;;  %v381_v36 = vsub.f32 %v361_v23, %v365_v27  ;;  %v350_v37 = vld [vmem:[%s1012_s21 + $0x40] sm:$0xff]  ;;  %v352_v38 = vld [vmem:[%s1012_s21 + $0x50] sm:$0xff]  ;;  %v364_v41 = vsub.f32 %v346_v34, %v348_v35  ;;  %v407_v17 = vld [vmem:[%s1030_s29 + $0x8] sm:$0xff] }
  0x37   : > { %v354_v39 = vld [vmem:[%s1012_s21 + $0x60] sm:$0xff]  ;;  %v377_v42 = vsub.f32 %v359_v22, %v363_v26  ;;  %v356_v44 = vld [vmem:[%s1012_s21 + $0x70] sm:$0xff]  ;;  %v368_v45 = vsub.f32 %v350_v37, %v352_v38  ;;  %v362_v51 = vadd.f32 %v348_v35, %v346_v34  ;;  %v366_v52 = vadd.f32 %v352_v38, %v350_v37 }
  0x38   : > { %v389_v43 = vsub.f32 %v369_v29, %v373_v32  ;;  %v385_v46 = vsub.f32 %v367_v28, %v371_v31  ;;  %v406_v48 = vld [vmem:[%s1030_s29] sm:$0xff]  ;;  %v372_v49 = vsub.f32 %v354_v39, %v356_v44  ;;  %v380_v50 = vsub.f32 %v360_v40, %v364_v41 }
  0x39   : > { %788 = vmatprep.mubr.f32.mxu0 %v406_v48  ;;  %v370_v54 = vadd.f32 %v356_v44, %v354_v39  ;;  %v376_v56 = vsub.f32 %v358_v47, %v362_v51  ;;  %v379_v60 = vadd.f32 %v365_v27, %v361_v23  ;;  %v387_v61 = vadd.f32 %v373_v32, %v369_v29 }
  0x3a   : > { %v405_v53 = vsub.f32 %v381_v36, %v389_v43  ;;  %v388_v55 = vsub.f32 %v368_v45, %v372_v49  ;;  %v403_v59 = vsub.f32 %v377_v42, %v385_v46  ;;  %v378_v63 = vadd.f32 %v364_v41, %v360_v40 }
  0x3b   : > { %v384_v57 = vsub.f32 %v366_v52, %v370_v54  ;;  %v386_v0 = vadd.f32 %v372_v49, %v368_v45  ;;  %v401_v1 = vsub.f32 %v379_v60, %v387_v61  ;;  %v375_v2 = vadd.f32 %v363_v26, %v359_v22 }
  0x3c   : > { %756 = vmatprep.subr.mxu0 %v405_v53  ;;  %v404_v58 = vsub.f32 %v380_v50, %v388_v55  ;;  %v383_v3 = vadd.f32 %v371_v31, %v367_v28  ;;  %v374_v5 = vadd.f32 %v362_v51, %v358_v47  ;;  %v382_v6 = vadd.f32 %v370_v54, %v366_v52 }
  0x3d   : > { %757 = vmatpush3.msra.mxu0 %v405_v53  ;;  %v402_v62 = vsub.f32 %v376_v56, %v384_v57  ;;  %v400_v4 = vsub.f32 %v378_v63, %v386_v0  ;;  %v397_v9 = vadd.f32 %v389_v43, %v381_v36  ;;  %v396_v10 = vadd.f32 %v388_v55, %v380_v50 }
  0x3e   : > { %758 = vmatprep.subr.mxu0 %v404_v58  ;;  %v399_v7 = vsub.f32 %v375_v2, %v383_v3  ;;  %v398_v8 = vsub.f32 %v374_v5, %v382_v6  ;;  %v395_v11 = vadd.f32 %v385_v46, %v377_v42  ;;  %v394_v12 = vadd.f32 %v384_v57, %v376_v56 }
  0x3f   : > { %759 = vmatpush3.msra.mxu0 %v404_v58  ;;  %v393_v13 = vadd.f32 %v387_v61, %v379_v60  ;;  %v392_v14 = vadd.f32 %v386_v0, %v378_v63  ;;  %v391_v15 = vadd.f32 %v383_v3, %v375_v2  ;;  %v390_v16 = vadd.f32 %v382_v6, %v374_v5 }
  0x40   : > { %760 = vmatprep.subr.mxu0 %v403_v59 }
  0x41   : > { %761 = vmatpush3.msra.mxu0 %v403_v59 }
  0x42   : > { %762 = vmatprep.subr.mxu0 %v402_v62 }
  0x43   : > { %763 = vmatpush3.msra.mxu0 %v402_v62 }
  0x44   : > { %764 = vmatprep.subr.mxu0 %v401_v1 }
  0x45   : > { %765 = vmatpush3.msra.mxu0 %v401_v1 }
  0x46   : > { %766 = vmatprep.subr.mxu0 %v400_v4 }
  0x47   : > { %767 = vmatpush3.msra.mxu0 %v400_v4 }
  0x48   : > { %768 = vmatprep.subr.mxu0 %v399_v7 }
  0x49   : > { %769 = vmatpush3.msra.mxu0 %v399_v7 }
  0x4a   : > { %770 = vmatprep.subr.mxu0 %v398_v8 }
  0x4b   : > { %771 = vmatpush3.msra.mxu0 %v398_v8 }
  0x4c   : > { %772 = vmatprep.subr.mxu0 %v397_v9 }
  0x4d   : > { %773 = vmatpush3.msra.mxu0 %v397_v9 }
  0x4e   : > { %774 = vmatprep.subr.mxu0 %v396_v10 }
  0x4f   : > { %775 = vmatpush3.msra.mxu0 %v396_v10 }
  0x50   : > { %776 = vmatprep.subr.mxu0 %v395_v11 }
  0x51   : > { %777 = vmatpush3.msra.mxu0 %v395_v11 }
  0x52   : > { %778 = vmatprep.subr.mxu0 %v394_v12 }
  0x53   : > { %779 = vmatpush3.msra.mxu0 %v394_v12 }
  0x54   : > { %780 = vmatprep.subr.mxu0 %v393_v13 }
  0x55   : > { %781 = vmatpush3.msra.mxu0 %v393_v13 }
  0x56   : > { %782 = vmatprep.subr.mxu0 %v392_v14 }
  0x57   : > { %783 = vmatpush3.msra.mxu0 %v392_v14 }
  0x58   : > { %784 = vmatprep.subr.mxu0 %v391_v15 }
  0x59   : > { %785 = vmatpush3.msra.mxu0 %v391_v15 }
  0x5a   : > { %786 = vmatprep.subr.mxu0 %v390_v16 }
  0x5b   : > { %787 = vmatpush3.msra.mxu0 %v390_v16 }
  0x5c   : > { %789 = vmatmul.mubr.f32.vlgmr.msra.gmra.mxu0 %v407_v17 }
 0x11c   : > { %v790_v18 = vpop.f32.mrf.mxu0 }
 0x11d   : > { %484 = vst [vmem:[%s1045_s7 + $0x8] sm:$0xff] %v790_v18  ;;  %v490_v21 = vmul.f32 %v790_v18, %v790_v18 }
 0x11e   : > { %v474_v19 = vpop.f32.mrf.mxu0 }
 0x11f   : > { %483 = vst [vmem:[%s1045_s7] sm:$0xff] %v474_v19  ;;  %485 = vadd.xlane.f32.xlu0 %v474_v19  ;;  %v489_v20 = vmul.f32 %v474_v19, %v474_v19 }
 0x121   : > { %491 = vadd.xlane.f32.xlu1 %v489_v20 }
 0x123   : > { %487 = vadd.xlane.f32.xlu0 %v790_v18 }
 0x125   : > { %493 = vadd.xlane.f32.xlu1 %v490_v21 }
 0x1a8   : > { %v486_v22 = vpop.xlane.xlu0 %485 }
 0x1aa   : > { %v492_v23 = vpop.xlane.xlu1 %491  ;;  %498 = sbr.rel (%p729_p13) target bundleno = 434 (0x1b2), region = 70 }
 0x1ac   : > { %v488_v24 = vpop.xlane.xlu0 %487 }
 0x1ae   : > { %v494_v25 = vpop.xlane.xlu1 %493 }
 0x1af   : > { %vm499_vm0 = vcmask 7168  }
 0x1b0   : > { %500 = vst.msk [vmem:[%s1035_s5] sm:$0xff] %vm499_vm0, %v486_v22  ;;  %501 = vst.msk [vmem:[%s1035_s5 + $0x8] sm:$0xff] %vm499_vm0, %v488_v24 }
 0x1b1   : > { %502 = vst.msk [vmem:[%s1035_s5 + $0x10] sm:$0xff] %vm499_vm0, %v492_v23  ;;  %503 = vst.msk [vmem:[%s1035_s5 + $0x18] sm:$0xff] %vm499_vm0, %v494_v25 }
 0x1b2 PF: > { %p730_p0 = scmp.eq.s32.totalorder %s885_s14, 0 }
 0x1b4   : > { %507 = sbr.rel (%p730_p0) target bundleno = 446 (0x1be), region = 74 }
 0x1b9   : > { %v508_v26 = vld [vmem:[%s1035_s5] sm:$0xff]  ;;  %vm516_vm1 = vcmask 7168   ;;  %v509_v27 = vld [vmem:[%s1035_s5 + $0x8] sm:$0xff]  ;;  %v510_v28 = vld [vmem:[%s1035_s5 + $0x10] sm:$0xff] }
 0x1ba   : > { %v512_v29 = vadd.f32 %v508_v26, %v486_v22  ;;  %v513_v30 = vadd.f32 %v509_v27, %v488_v24  ;;  %v514_v31 = vadd.f32 %v510_v28, %v492_v23  ;;  %v511_v32 = vld [vmem:[%s1035_s5 + $0x18] sm:$0xff] }
 0x1bb   : > { %v515_v33 = vadd.f32 %v511_v32, %v494_v25 }
 0x1bc   : > { %517 = vst.msk [vmem:[%s1035_s5] sm:$0xff] %vm516_vm1, %v512_v29  ;;  %518 = vst.msk [vmem:[%s1035_s5 + $0x8] sm:$0xff] %vm516_vm1, %v513_v30 }
 0x1bd   : > { %519 = vst.msk [vmem:[%s1035_s5 + $0x10] sm:$0xff] %vm516_vm1, %v514_v31  ;;  %520 = vst.msk [vmem:[%s1035_s5 + $0x18] sm:$0xff] %vm516_vm1, %v515_v33 }
 0x1be PF: > { %536 = sbr.rel (!%p971_p6) target bundleno = 451 (0x1c3), region = 78  ;;  %s732_s12 = sshll.u32 (%p971_p6), %s889_s15, 3  ;;  %v573_v34 = vld [vmem:[%s1045_s7] sm:$0xff] (%p971_p6)  ;;  %v575_v35 = vld [vmem:[%s1045_s7 + $0x8] sm:$0xff] (%p971_p6) }
 0x1bf   : > { %s540_s8 = sadd.s32 (%p971_p6), %s885_s14, %s732_s12 }
 0x1c0   : > { %s733_s9 = sshll.u32 (%p971_p6), %s540_s8, 3 }
 0x1c1   : > { %s542_s21 = scalar_lea.vmem (%p971_p6), %s1095_s2, %s733_s9 }
 0x1c2   : > { %574 = vst [vmem:[%s542_s21] sm:$0xff] (%p971_p6), %v573_v34  ;;  %576 = vst [vmem:[%s542_s21 + $0x20] sm:$0xff] (%p971_p6), %v575_v35 }
 0x1c3 PF: > { %s14_s18 = sadd.s32 1, %s901_s18   ;;  %s1098_s12 = smov %s881_s13 }
 0x1c4   : > { %p11_p1 = scmp.ge.s32.totalorder %s14_s18, 10   ;;  %s1099_s13 = smov %s979_s27 }
 0x1c5   : > { %s1100_s14 = smov %s893_s16  ;;  %s1101_s15 = smov %s897_s17 }
 0x1c6   : > { %s1102_s16 = smov %s1105_s19  ;;  %s1103_s17 = smov %s1109_s20 }
 0x1c7   :  { %13 = sbr.rel (!%p11_p1) target bundleno = 4 (0x4), region = 162 }

</bundles_post_ra>
